<compile_context>
chip_gen: v7x
topology: tpu7x:2x2x1
jax: 0.10.0
libtpu: 0.0.40
codegen_flags: <defaults>
</compile_context>

<pallas_src>
import functools
import math

import jax
import jax.numpy as jnp
from jax.experimental import pallas as pl
from jax.experimental.pallas import tpu as pltpu


def conv_pool_stats_kernel(x_ref, w_ref, b_ref, mask_ref, psel_ref, stats_ref,
                           *, Cin, Cout, K, P, Wl):
    """Per batch-block nb (grid axis):
       x_ref:    (1, P, Cin, Wl+D) zero-padded, phase-split, lane-folded input:
                 x_ref[0, r, ci, seg*Mpad + m] = x_pad[nb*TN+seg, ci, m*P + r]
       w_ref:    (Cin*K, Cout, 1)  sign(gamma)-folded conv weight columns
       b_ref:    (Cout, 1)         sign(gamma)-folded conv bias
       mask_ref: (1, Wl)           1.0 on valid lanes (m < Lp), 0.0 on halo lanes
       psel_ref: (1, Cout, Wl)     running window-max of sign(gamma)*conv(x)
       stats_ref:(1, 2*Cout, 1)    per-channel [sum ; sum-of-squares] of the block
    """
    mask = mask_ref[...]                              # (1, Wl)
    bias = b_ref[...]                                 # (Cout, 1)
    # One load per phase plane; rows/taps are sliced lazily below (static slices
    # are views -> short live ranges, no big hoisted vreg lists).
    xr = [x_ref[0, r] for r in range(P)]              # each (Cin, Wl + D)

    psel = ssum = ssq = None
    for p in range(P):                                # position inside pool window
        acc = jnp.zeros((Cout, Wl), jnp.float32)
        for k in range(K):
            d, r = divmod(p + k, P)                   # phase plane r, lane shift d
            for ci in range(Cin):
                row = xr[r][ci:ci + 1, d:d + Wl]      # (1, Wl) static view
                # (Cout,1) * (1,Wl) broadcast FMA on the VPU.
                # TODO(synk): for larger Cin*K / Cout switch this inner product
                # to an [Lp_tile, Cin*K] x [Cin*K, Cout] MXU matmul (MXU is idle).
                acc = acc + w_ref[ci * K + k] * row
        acc = acc + bias
        am = acc * mask                               # zero halo lanes for stats
        s1 = jnp.sum(am, axis=-1, keepdims=True)      # (Cout, 1)
        s2 = jnp.sum(am * acc, axis=-1, keepdims=True)
        if p == 0:
            psel, ssum, ssq = acc, s1, s2
        else:
            psel = jnp.maximum(psel, acc)
            ssum = ssum + s1
            ssq = ssq + s2

    psel_ref[0] = psel
    stats_ref[0, 0:Cout] = ssum
    stats_ref[0, Cout:2 * Cout] = ssq


def affine_gelu_kernel(scale_ref, shift_ref, psel_ref, o_ref, *, TN, Mpad, Lp):
    """scale/shift: (Cout,1) folded BN affine.  scale = |gamma|*rsqrt(var+eps) >= 0,
       so MaxPool(BN(y)) == scale * psel + shift with psel = window-max of
       sign(gamma)*y.  psel_ref: (1, Cout, TN*Mpad); o_ref: (TN, Cout, Lp)."""
    y = psel_ref[0] * scale_ref[...] + shift_ref[...]          # (Cout, TN*Mpad)
    # Exact (erf) GELU, matching torch.nn.GELU(); halo lanes are finite and
    # simply never stored.
    g = 0.5 * y * (1.0 + jax.lax.erf(y * (1.0 / math.sqrt(2.0))))
    for seg in range(TN):                                       # emit NCL' directly
        o_ref[seg] = g[:, seg * Mpad: seg * Mpad + Lp]


def _pick_batch_block(N, Mpad, *, target_lanes=512, max_rows=32):
    """Largest divisor of N (<= max_rows) whose lane fold stays near target_lanes."""
    cap = max(1, min(max_rows, N, max(1, target_lanes // max(Mpad, 1))))
    tn = 1
    for d in range(cap, 0, -1):
        if N % d == 0:
            tn = d
            break
    # v7x has two TensorCores: prefer an even "parallel" grid extent when that
    # still leaves a lane-dense (>=128-lane) block.
    if (N // tn) % 2 == 1 and tn % 2 == 0 and (tn // 2) * Mpad >= 128:
        tn //= 2
    return tn


def conv_layer_forward(x_ncl, w, b, gamma, beta, *, pool_size=None, eps=1e-5):
    """x_ncl: (N, Cin, L); w: (Cout, Cin, K); b/gamma/beta: (Cout,).
    Returns (N, Cout, L // pool_size) exactly like the PyTorch module forward
    (Conv1d -> BatchNorm1d(batch stats) -> Dropout(0) -> MaxPool1d -> GELU)."""
    N, Cin, L = x_ncl.shape
    Cout, Cin_w, K = w.shape
    assert Cin_w == Cin
    assert K % 2 == 1, "odd kernel_size assumed ('same'-length conv output)"
    P = 1 if pool_size is None else int(pool_size)
    assert L % P == 0
    pad = K // 2
    Lp = L // P
    D = (P + K - 2) // P                 # conv-halo columns per phase plane
    Mpad = Lp + D                        # per-batch-element segment width (lanes)
    TN = _pick_batch_block(N, Mpad)      # batch elements folded onto lanes/step
    NB = N // TN
    Wl = TN * Mpad                       # lane width of pooled planes
    Wx = Wl + D                          # + D trailing zero lanes for tap slices
    total_len = Mpad * P
    right_pad = total_len - L - pad      # >= pad by construction of D

    f32 = jnp.float32
    x32 = x_ncl.astype(f32)
    g32 = gamma.astype(f32)
    bt32 = beta.astype(f32)
    sgn = jnp.where(g32 >= 0.0, 1.0, -1.0)      # sign(BN scale) == sign(gamma)
    w_s = w.astype(f32) * sgn[:, None, None]    # fold sign into conv weights/bias
    b_s = b.astype(f32) * sgn

    # Single wrapper repack pass over x: zero-pad the conv halo, phase-split the
    # length axis and fold TN batch elements onto the lane axis (one Mpad-lane
    # segment each) so the kernel is lane-dense and free of strided lane access.
    # TODO(synk): fold this repack into kernel 1 (strided ref reads + in-kernel
    # halo masks) to drop this extra HBM pass over x for very large inputs.
    x_pad = jnp.pad(x32, ((0, 0), (0, 0), (pad, right_pad)))        # (N,Cin,Mpad*P)
    xph = x_pad.reshape(NB, TN, Cin, Mpad, P)
    xph = jnp.transpose(xph, (0, 4, 2, 1, 3)).reshape(NB, P, Cin, Wl)
    xph = jnp.pad(xph, ((0, 0), (0, 0), (0, 0), (0, D)))            # (NB,P,Cin,Wx)

    w_cols = jnp.transpose(w_s, (1, 2, 0)).reshape(Cin * K, Cout)[:, :, None]
    b2 = b_s.reshape(Cout, 1)
    lane = jnp.arange(Wl, dtype=jnp.int32)
    mask = ((lane % Mpad) < Lp).astype(f32)[None, :]                # (1, Wl)

    cparams = pltpu.CompilerParams(
        dimension_semantics=("parallel",),      # megacore / v7x dual-TC split
        vmem_limit_bytes=32 * 1024 * 1024,      # within v7x's 64 MiB-per-TC VMEM
    )

    # Pass 1: conv + window-max of sign(gamma)*y + fused per-channel sum/sumsq.
    k1 = functools.partial(conv_pool_stats_kernel,
                           Cin=Cin, Cout=Cout, K=K, P=P, Wl=Wl)
    psel, stats = pl.pallas_call(
        k1,
        out_shape=(
            jax.ShapeDtypeStruct((NB, Cout, Wl), f32),
            jax.ShapeDtypeStruct((NB, 2 * Cout, 1), f32),
        ),
        grid=(NB,),
        in_specs=[
            pl.BlockSpec((1, P, Cin, Wx), lambda nb: (nb, 0, 0, 0)),
            pl.BlockSpec((Cin * K, Cout, 1), lambda nb: (0, 0, 0)),
            pl.BlockSpec((Cout, 1), lambda nb: (0, 0)),
            pl.BlockSpec((1, Wl), lambda nb: (0, 0)),
        ],
        out_specs=(
            pl.BlockSpec((1, Cout, Wl), lambda nb: (nb, 0, 0)),
            pl.BlockSpec((1, 2 * Cout, 1), lambda nb: (nb, 0, 0)),
        ),
        compiler_params=cparams,
    )(xph, w_cols, b2, mask)

    # Global BN batch statistics: a trivial XLA reduce over the per-block partial
    # sums (hoisted out of kernel 2, which becomes a pure epilogue).
    count = float(N * L)
    tot = jnp.sum(stats, axis=0)[:, 0]           # (2*Cout,)
    mean_s = tot[:Cout] / count                  # mean of sign(gamma)*y
    ex2 = tot[Cout:] / count
    mean = sgn * mean_s
    # Single-pass variance (E[y^2] - mean^2); fine at these magnitudes.
    var = jnp.maximum(ex2 - mean_s * mean_s, 0.0)
    rstd = jax.lax.rsqrt(var + eps)
    ascale = (jnp.abs(g32) * rstd).reshape(Cout, 1)      # = sign(gamma)*scale >= 0
    shift = (bt32 - mean * g32 * rstd).reshape(Cout, 1)

    # Pass 2: BN affine + (already-folded) pool selection + exact GELU epilogue.
    # TODO(synk): nonzero dropout would need per-element masks before pooling
    # (pltpu.prng_seed / prng_random_bits); p=0.0 is the identity here.
    k2 = functools.partial(affine_gelu_kernel, TN=TN, Mpad=Mpad, Lp=Lp)
    out = pl.pallas_call(
        k2,
        out_shape=jax.ShapeDtypeStruct((N, Cout, Lp), f32),
        grid=(NB,),
        in_specs=[
            pl.BlockSpec((Cout, 1), lambda nb: (0, 0)),
            pl.BlockSpec((Cout, 1), lambda nb: (0, 0)),
            pl.BlockSpec((1, Cout, Wl), lambda nb: (nb, 0, 0)),
        ],
        out_specs=pl.BlockSpec((TN, Cout, Lp), lambda nb: (nb, 0, 0)),
        compiler_params=cparams,
    )(ascale, shift, psel)

    return out                                            # (N, Cout, Lp)


def conv_layer_reference(x_ncl, w, b, gamma, beta, *, pool_size, eps=1e-5):
    """Pure-JAX reference mirroring the PyTorch forward (training-mode BN)."""
    pad = w.shape[-1] // 2
    y = jax.lax.conv_general_dilated(
        x_ncl.astype(jnp.float32), w.astype(jnp.float32),
        window_strides=(1,), padding=[(pad, pad)],
        dimension_numbers=("NCH", "OIH", "NCH"))
    y = y + b[None, :, None]
    mean = jnp.mean(y, axis=(0, 2), keepdims=True)
    var = jnp.mean((y - mean) ** 2, axis=(0, 2), keepdims=True)
    y = (y - mean) / jnp.sqrt(var + eps)
    y = y * gamma[None, :, None] + beta[None, :, None]
    N, C, L = y.shape
    Lp = L // pool_size
    y = jnp.max(y[:, :, : Lp * pool_size].reshape(N, C, Lp, pool_size), axis=-1)
    return 0.5 * y * (1.0 + jax.lax.erf(y / math.sqrt(2.0)))


if __name__ == "__main__":
    # ConvLayer(in_channels=4, out_channels=8, kernel_size=5, pool_size=2,
    #           batch_norm=True, dropout=0.0, activation_fn=nn.GELU())
    N, Cin, Cout, K, L, POOL = 2, 4, 8, 5, 16, 2

    key = jax.random.PRNGKey(0)
    kx, kw, kb, kg, kbt = jax.random.split(key, 5)
    x = jax.random.normal(kx, (N, Cin, L), dtype=jnp.float32)
    w = 0.1 * jax.random.normal(kw, (Cout, Cin, K), dtype=jnp.float32)
    b = 0.1 * jax.random.normal(kb, (Cout,), dtype=jnp.float32)
    gamma = 1.0 + 0.1 * jax.random.normal(kg, (Cout,), dtype=jnp.float32)
    gamma = gamma.at[0].multiply(-1.0)   # exercise the negative-scale pool path
    beta = 0.1 * jax.random.normal(kbt, (Cout,), dtype=jnp.float32)

    out = jax.block_until_ready(
        conv_layer_forward(x, w, b, gamma, beta, pool_size=POOL))
    ref = jax.block_until_ready(
        conv_layer_reference(x, w, b, gamma, beta, pool_size=POOL))

    assert out.shape == (N, Cout, L // POOL), out.shape
    assert jnp.allclose(out, ref, atol=1e-4, rtol=1e-4), (
        float(jnp.max(jnp.abs(out - ref))))
    print("KERNEL_OK")
</pallas_src>

<mosaic_0001>
module attributes {stable_mosaic.version = 11 : i64} {
  func.func @conv_pool_stats_kernel(%arg0: i32, %arg1: memref<1x2x4x22xf32, #tpu.memory_space<vmem>>, %arg2: memref<20x8x1xf32, #tpu.memory_space<vmem>>, %arg3: memref<8x1xf32, #tpu.memory_space<vmem>>, %arg4: memref<1x20xf32, #tpu.memory_space<vmem>>, %arg5: memref<1x8x20xf32, #tpu.memory_space<vmem>>, %arg6: memref<1x16x1xf32, #tpu.memory_space<vmem>>) attributes {dimension_semantics = [#tpu.dimension_semantics<parallel>], iteration_bounds = array<i64: 1>, scalar_prefetch = 0 : i64, scratch_operands = 0 : i64, tpu.core_type = #tpu.core_type<tc>, window_params = [{transform_indices = @transform_0, window_bounds = array<i64: 1, 2, 4, 22>}, {pipeline_mode = #tpu.pipeline_mode<synchronous>, transform_indices = @transform_1, window_bounds = array<i64: 20, 8, 1>}, {pipeline_mode = #tpu.pipeline_mode<synchronous>, transform_indices = @transform_2, window_bounds = array<i64: 8, 1>}, {pipeline_mode = #tpu.pipeline_mode<synchronous>, transform_indices = @transform_3, window_bounds = array<i64: 1, 20>}, {transform_indices = @transform_4, window_bounds = array<i64: 1, 8, 20>}, {transform_indices = @transform_5, window_bounds = array<i64: 1, 16, 1>}]} {
    %c0 = arith.constant 0 : index
    %c0_0 = arith.constant 0 : index
    %0 = vector.load %arg4[%c0, %c0_0] : memref<1x20xf32, #tpu.memory_space<vmem>>, vector<1x20xf32>
    %c0_1 = arith.constant 0 : index
    %c0_2 = arith.constant 0 : index
    %1 = vector.load %arg3[%c0_1, %c0_2] : memref<8x1xf32, #tpu.memory_space<vmem>>, vector<8x1xf32>
    %c0_3 = arith.constant 0 : index
    %c0_4 = arith.constant 0 : index
    %c0_5 = arith.constant 0 : index
    %c0_6 = arith.constant 0 : index
    %2 = vector.load %arg1[%c0_3, %c0_4, %c0_5, %c0_6] : memref<1x2x4x22xf32, #tpu.memory_space<vmem>>, vector<1x1x4x22xf32>
    %3 = vector.shape_cast %2 : vector<1x1x4x22xf32> to vector<4x22xf32>
    %c0_7 = arith.constant 0 : index
    %c1 = arith.constant 1 : index
    %c0_8 = arith.constant 0 : index
    %c0_9 = arith.constant 0 : index
    %4 = vector.load %arg1[%c0_7, %c1, %c0_8, %c0_9] : memref<1x2x4x22xf32, #tpu.memory_space<vmem>>, vector<1x1x4x22xf32>
    %5 = vector.shape_cast %4 : vector<1x1x4x22xf32> to vector<4x22xf32>
    %cst = arith.constant 0.000000e+00 : f32
    %6 = vector.broadcast %cst : f32 to vector<8x20xf32>
    %7 = vector.extract_strided_slice %3 {offsets = [0, 0], sizes = [1, 20], strides = [1, 1]} : vector<4x22xf32> to vector<1x20xf32>
    %c0_10 = arith.constant 0 : index
    %c0_11 = arith.constant 0 : index
    %c0_12 = arith.constant 0 : index
    %8 = vector.load %arg2[%c0_10, %c0_11, %c0_12] : memref<20x8x1xf32, #tpu.memory_space<vmem>>, vector<1x8x1xf32>
    %9 = vector.shape_cast %8 : vector<1x8x1xf32> to vector<8x1xf32>
    %10 = vector.broadcast %9 : vector<8x1xf32> to vector<8x20xf32>
    %11 = vector.broadcast %7 : vector<1x20xf32> to vector<8x20xf32>
    %12 = arith.mulf %10, %11 : vector<8x20xf32>
    %13 = arith.addf %6, %12 : vector<8x20xf32>
    %14 = vector.extract_strided_slice %3 {offsets = [1, 0], sizes = [1, 20], strides = [1, 1]} : vector<4x22xf32> to vector<1x20xf32>
    %c5 = arith.constant 5 : index
    %c0_13 = arith.constant 0 : index
    %c0_14 = arith.constant 0 : index
    %15 = vector.load %arg2[%c5, %c0_13, %c0_14] : memref<20x8x1xf32, #tpu.memory_space<vmem>>, vector<1x8x1xf32>
    %16 = vector.shape_cast %15 : vector<1x8x1xf32> to vector<8x1xf32>
    %17 = vector.broadcast %16 : vector<8x1xf32> to vector<8x20xf32>
    %18 = vector.broadcast %14 : vector<1x20xf32> to vector<8x20xf32>
    %19 = arith.mulf %17, %18 : vector<8x20xf32>
    %20 = arith.addf %13, %19 : vector<8x20xf32>
    %21 = vector.extract_strided_slice %3 {offsets = [2, 0], sizes = [1, 20], strides = [1, 1]} : vector<4x22xf32> to vector<1x20xf32>
    %c10 = arith.constant 10 : index
    %c0_15 = arith.constant 0 : index
    %c0_16 = arith.constant 0 : index
    %22 = vector.load %arg2[%c10, %c0_15, %c0_16] : memref<20x8x1xf32, #tpu.memory_space<vmem>>, vector<1x8x1xf32>
    %23 = vector.shape_cast %22 : vector<1x8x1xf32> to vector<8x1xf32>
    %24 = vector.broadcast %23 : vector<8x1xf32> to vector<8x20xf32>
    %25 = vector.broadcast %21 : vector<1x20xf32> to vector<8x20xf32>
    %26 = arith.mulf %24, %25 : vector<8x20xf32>
    %27 = arith.addf %20, %26 : vector<8x20xf32>
    %28 = vector.extract_strided_slice %3 {offsets = [3, 0], sizes = [1, 20], strides = [1, 1]} : vector<4x22xf32> to vector<1x20xf32>
    %c15 = arith.constant 15 : index
    %c0_17 = arith.constant 0 : index
    %c0_18 = arith.constant 0 : index
    %29 = vector.load %arg2[%c15, %c0_17, %c0_18] : memref<20x8x1xf32, #tpu.memory_space<vmem>>, vector<1x8x1xf32>
    %30 = vector.shape_cast %29 : vector<1x8x1xf32> to vector<8x1xf32>
    %31 = vector.broadcast %30 : vector<8x1xf32> to vector<8x20xf32>
    %32 = vector.broadcast %28 : vector<1x20xf32> to vector<8x20xf32>
    %33 = arith.mulf %31, %32 : vector<8x20xf32>
    %34 = arith.addf %27, %33 : vector<8x20xf32>
    %35 = vector.extract_strided_slice %5 {offsets = [0, 0], sizes = [1, 20], strides = [1, 1]} : vector<4x22xf32> to vector<1x20xf32>
    %c1_19 = arith.constant 1 : index
    %c0_20 = arith.constant 0 : index
    %c0_21 = arith.constant 0 : index
    %36 = vector.load %arg2[%c1_19, %c0_20, %c0_21] : memref<20x8x1xf32, #tpu.memory_space<vmem>>, vector<1x8x1xf32>
    %37 = vector.shape_cast %36 : vector<1x8x1xf32> to vector<8x1xf32>
    %38 = vector.broadcast %37 : vector<8x1xf32> to vector<8x20xf32>
    %39 = vector.broadcast %35 : vector<1x20xf32> to vector<8x20xf32>
    %40 = arith.mulf %38, %39 : vector<8x20xf32>
    %41 = arith.addf %34, %40 : vector<8x20xf32>
    %42 = vector.extract_strided_slice %5 {offsets = [1, 0], sizes = [1, 20], strides = [1, 1]} : vector<4x22xf32> to vector<1x20xf32>
    %c6 = arith.constant 6 : index
    %c0_22 = arith.constant 0 : index
    %c0_23 = arith.constant 0 : index
    %43 = vector.load %arg2[%c6, %c0_22, %c0_23] : memref<20x8x1xf32, #tpu.memory_space<vmem>>, vector<1x8x1xf32>
    %44 = vector.shape_cast %43 : vector<1x8x1xf32> to vector<8x1xf32>
    %45 = vector.broadcast %44 : vector<8x1xf32> to vector<8x20xf32>
    %46 = vector.broadcast %42 : vector<1x20xf32> to vector<8x20xf32>
    %47 = arith.mulf %45, %46 : vector<8x20xf32>
    %48 = arith.addf %41, %47 : vector<8x20xf32>
    %49 = vector.extract_strided_slice %5 {offsets = [2, 0], sizes = [1, 20], strides = [1, 1]} : vector<4x22xf32> to vector<1x20xf32>
    %c11 = arith.constant 11 : index
    %c0_24 = arith.constant 0 : index
    %c0_25 = arith.constant 0 : index
    %50 = vector.load %arg2[%c11, %c0_24, %c0_25] : memref<20x8x1xf32, #tpu.memory_space<vmem>>, vector<1x8x1xf32>
    %51 = vector.shape_cast %50 : vector<1x8x1xf32> to vector<8x1xf32>
    %52 = vector.broadcast %51 : vector<8x1xf32> to vector<8x20xf32>
    %53 = vector.broadcast %49 : vector<1x20xf32> to vector<8x20xf32>
    %54 = arith.mulf %52, %53 : vector<8x20xf32>
    %55 = arith.addf %48, %54 : vector<8x20xf32>
    %56 = vector.extract_strided_slice %5 {offsets = [3, 0], sizes = [1, 20], strides = [1, 1]} : vector<4x22xf32> to vector<1x20xf32>
    %c16 = arith.constant 16 : index
    %c0_26 = arith.constant 0 : index
    %c0_27 = arith.constant 0 : index
    %57 = vector.load %arg2[%c16, %c0_26, %c0_27] : memref<20x8x1xf32, #tpu.memory_space<vmem>>, vector<1x8x1xf32>
    %58 = vector.shape_cast %57 : vector<1x8x1xf32> to vector<8x1xf32>
    %59 = vector.broadcast %58 : vector<8x1xf32> to vector<8x20xf32>
    %60 = vector.broadcast %56 : vector<1x20xf32> to vector<8x20xf32>
    %61 = arith.mulf %59, %60 : vector<8x20xf32>
    %62 = arith.addf %55, %61 : vector<8x20xf32>
    %63 = vector.extract_strided_slice %3 {offsets = [0, 1], sizes = [1, 20], strides = [1, 1]} : vector<4x22xf32> to vector<1x20xf32>
    %c2 = arith.constant 2 : index
    %c0_28 = arith.constant 0 : index
    %c0_29 = arith.constant 0 : index
    %64 = vector.load %arg2[%c2, %c0_28, %c0_29] : memref<20x8x1xf32, #tpu.memory_space<vmem>>, vector<1x8x1xf32>
    %65 = vector.shape_cast %64 : vector<1x8x1xf32> to vector<8x1xf32>
    %66 = vector.broadcast %65 : vector<8x1xf32> to vector<8x20xf32>
    %67 = vector.broadcast %63 : vector<1x20xf32> to vector<8x20xf32>
    %68 = arith.mulf %66, %67 : vector<8x20xf32>
    %69 = arith.addf %62, %68 : vector<8x20xf32>
    %70 = vector.extract_strided_slice %3 {offsets = [1, 1], sizes = [1, 20], strides = [1, 1]} : vector<4x22xf32> to vector<1x20xf32>
    %c7 = arith.constant 7 : index
    %c0_30 = arith.constant 0 : index
    %c0_31 = arith.constant 0 : index
    %71 = vector.load %arg2[%c7, %c0_30, %c0_31] : memref<20x8x1xf32, #tpu.memory_space<vmem>>, vector<1x8x1xf32>
    %72 = vector.shape_cast %71 : vector<1x8x1xf32> to vector<8x1xf32>
    %73 = vector.broadcast %72 : vector<8x1xf32> to vector<8x20xf32>
    %74 = vector.broadcast %70 : vector<1x20xf32> to vector<8x20xf32>
    %75 = arith.mulf %73, %74 : vector<8x20xf32>
    %76 = arith.addf %69, %75 : vector<8x20xf32>
    %77 = vector.extract_strided_slice %3 {offsets = [2, 1], sizes = [1, 20], strides = [1, 1]} : vector<4x22xf32> to vector<1x20xf32>
    %c12 = arith.constant 12 : index
    %c0_32 = arith.constant 0 : index
    %c0_33 = arith.constant 0 : index
    %78 = vector.load %arg2[%c12, %c0_32, %c0_33] : memref<20x8x1xf32, #tpu.memory_space<vmem>>, vector<1x8x1xf32>
    %79 = vector.shape_cast %78 : vector<1x8x1xf32> to vector<8x1xf32>
    %80 = vector.broadcast %79 : vector<8x1xf32> to vector<8x20xf32>
    %81 = vector.broadcast %77 : vector<1x20xf32> to vector<8x20xf32>
    %82 = arith.mulf %80, %81 : vector<8x20xf32>
    %83 = arith.addf %76, %82 : vector<8x20xf32>
    %84 = vector.extract_strided_slice %3 {offsets = [3, 1], sizes = [1, 20], strides = [1, 1]} : vector<4x22xf32> to vector<1x20xf32>
    %c17 = arith.constant 17 : index
    %c0_34 = arith.constant 0 : index
    %c0_35 = arith.constant 0 : index
    %85 = vector.load %arg2[%c17, %c0_34, %c0_35] : memref<20x8x1xf32, #tpu.memory_space<vmem>>, vector<1x8x1xf32>
    %86 = vector.shape_cast %85 : vector<1x8x1xf32> to vector<8x1xf32>
    %87 = vector.broadcast %86 : vector<8x1xf32> to vector<8x20xf32>
    %88 = vector.broadcast %84 : vector<1x20xf32> to vector<8x20xf32>
    %89 = arith.mulf %87, %88 : vector<8x20xf32>
    %90 = arith.addf %83, %89 : vector<8x20xf32>
    %91 = vector.extract_strided_slice %5 {offsets = [0, 1], sizes = [1, 20], strides = [1, 1]} : vector<4x22xf32> to vector<1x20xf32>
    %c3 = arith.constant 3 : index
    %c0_36 = arith.constant 0 : index
    %c0_37 = arith.constant 0 : index
    %92 = vector.load %arg2[%c3, %c0_36, %c0_37] : memref<20x8x1xf32, #tpu.memory_space<vmem>>, vector<1x8x1xf32>
    %93 = vector.shape_cast %92 : vector<1x8x1xf32> to vector<8x1xf32>
    %94 = vector.broadcast %93 : vector<8x1xf32> to vector<8x20xf32>
    %95 = vector.broadcast %91 : vector<1x20xf32> to vector<8x20xf32>
    %96 = arith.mulf %94, %95 : vector<8x20xf32>
    %97 = arith.addf %90, %96 : vector<8x20xf32>
    %98 = vector.extract_strided_slice %5 {offsets = [1, 1], sizes = [1, 20], strides = [1, 1]} : vector<4x22xf32> to vector<1x20xf32>
    %c8 = arith.constant 8 : index
    %c0_38 = arith.constant 0 : index
    %c0_39 = arith.constant 0 : index
    %99 = vector.load %arg2[%c8, %c0_38, %c0_39] : memref<20x8x1xf32, #tpu.memory_space<vmem>>, vector<1x8x1xf32>
    %100 = vector.shape_cast %99 : vector<1x8x1xf32> to vector<8x1xf32>
    %101 = vector.broadcast %100 : vector<8x1xf32> to vector<8x20xf32>
    %102 = vector.broadcast %98 : vector<1x20xf32> to vector<8x20xf32>
    %103 = arith.mulf %101, %102 : vector<8x20xf32>
    %104 = arith.addf %97, %103 : vector<8x20xf32>
    %105 = vector.extract_strided_slice %5 {offsets = [2, 1], sizes = [1, 20], strides = [1, 1]} : vector<4x22xf32> to vector<1x20xf32>
    %c13 = arith.constant 13 : index
    %c0_40 = arith.constant 0 : index
    %c0_41 = arith.constant 0 : index
    %106 = vector.load %arg2[%c13, %c0_40, %c0_41] : memref<20x8x1xf32, #tpu.memory_space<vmem>>, vector<1x8x1xf32>
    %107 = vector.shape_cast %106 : vector<1x8x1xf32> to vector<8x1xf32>
    %108 = vector.broadcast %107 : vector<8x1xf32> to vector<8x20xf32>
    %109 = vector.broadcast %105 : vector<1x20xf32> to vector<8x20xf32>
    %110 = arith.mulf %108, %109 : vector<8x20xf32>
    %111 = arith.addf %104, %110 : vector<8x20xf32>
    %112 = vector.extract_strided_slice %5 {offsets = [3, 1], sizes = [1, 20], strides = [1, 1]} : vector<4x22xf32> to vector<1x20xf32>
    %c18 = arith.constant 18 : index
    %c0_42 = arith.constant 0 : index
    %c0_43 = arith.constant 0 : index
    %113 = vector.load %arg2[%c18, %c0_42, %c0_43] : memref<20x8x1xf32, #tpu.memory_space<vmem>>, vector<1x8x1xf32>
    %114 = vector.shape_cast %113 : vector<1x8x1xf32> to vector<8x1xf32>
    %115 = vector.broadcast %114 : vector<8x1xf32> to vector<8x20xf32>
    %116 = vector.broadcast %112 : vector<1x20xf32> to vector<8x20xf32>
    %117 = arith.mulf %115, %116 : vector<8x20xf32>
    %118 = arith.addf %111, %117 : vector<8x20xf32>
    %119 = vector.extract_strided_slice %3 {offsets = [0, 2], sizes = [1, 20], strides = [1, 1]} : vector<4x22xf32> to vector<1x20xf32>
    %c4 = arith.constant 4 : index
    %c0_44 = arith.constant 0 : index
    %c0_45 = arith.constant 0 : index
    %120 = vector.load %arg2[%c4, %c0_44, %c0_45] : memref<20x8x1xf32, #tpu.memory_space<vmem>>, vector<1x8x1xf32>
    %121 = vector.shape_cast %120 : vector<1x8x1xf32> to vector<8x1xf32>
    %122 = vector.broadcast %121 : vector<8x1xf32> to vector<8x20xf32>
    %123 = vector.broadcast %119 : vector<1x20xf32> to vector<8x20xf32>
    %124 = arith.mulf %122, %123 : vector<8x20xf32>
    %125 = arith.addf %118, %124 : vector<8x20xf32>
    %126 = vector.extract_strided_slice %3 {offsets = [1, 2], sizes = [1, 20], strides = [1, 1]} : vector<4x22xf32> to vector<1x20xf32>
    %c9 = arith.constant 9 : index
    %c0_46 = arith.constant 0 : index
    %c0_47 = arith.constant 0 : index
    %127 = vector.load %arg2[%c9, %c0_46, %c0_47] : memref<20x8x1xf32, #tpu.memory_space<vmem>>, vector<1x8x1xf32>
    %128 = vector.shape_cast %127 : vector<1x8x1xf32> to vector<8x1xf32>
    %129 = vector.broadcast %128 : vector<8x1xf32> to vector<8x20xf32>
    %130 = vector.broadcast %126 : vector<1x20xf32> to vector<8x20xf32>
    %131 = arith.mulf %129, %130 : vector<8x20xf32>
    %132 = arith.addf %125, %131 : vector<8x20xf32>
    %133 = vector.extract_strided_slice %3 {offsets = [2, 2], sizes = [1, 20], strides = [1, 1]} : vector<4x22xf32> to vector<1x20xf32>
    %c14 = arith.constant 14 : index
    %c0_48 = arith.constant 0 : index
    %c0_49 = arith.constant 0 : index
    %134 = vector.load %arg2[%c14, %c0_48, %c0_49] : memref<20x8x1xf32, #tpu.memory_space<vmem>>, vector<1x8x1xf32>
    %135 = vector.shape_cast %134 : vector<1x8x1xf32> to vector<8x1xf32>
    %136 = vector.broadcast %135 : vector<8x1xf32> to vector<8x20xf32>
    %137 = vector.broadcast %133 : vector<1x20xf32> to vector<8x20xf32>
    %138 = arith.mulf %136, %137 : vector<8x20xf32>
    %139 = arith.addf %132, %138 : vector<8x20xf32>
    %140 = vector.extract_strided_slice %3 {offsets = [3, 2], sizes = [1, 20], strides = [1, 1]} : vector<4x22xf32> to vector<1x20xf32>
    %c19 = arith.constant 19 : index
    %c0_50 = arith.constant 0 : index
    %c0_51 = arith.constant 0 : index
    %141 = vector.load %arg2[%c19, %c0_50, %c0_51] : memref<20x8x1xf32, #tpu.memory_space<vmem>>, vector<1x8x1xf32>
    %142 = vector.shape_cast %141 : vector<1x8x1xf32> to vector<8x1xf32>
    %143 = vector.broadcast %142 : vector<8x1xf32> to vector<8x20xf32>
    %144 = vector.broadcast %140 : vector<1x20xf32> to vector<8x20xf32>
    %145 = arith.mulf %143, %144 : vector<8x20xf32>
    %146 = arith.addf %139, %145 : vector<8x20xf32>
    %147 = vector.broadcast %1 : vector<8x1xf32> to vector<8x20xf32>
    %148 = arith.addf %146, %147 : vector<8x20xf32>
    %149 = vector.broadcast %0 : vector<1x20xf32> to vector<8x20xf32>
    %150 = arith.mulf %148, %149 : vector<8x20xf32>
    %cst_52 = arith.constant dense<0.000000e+00> : vector<8xf32>
    %151 = vector.multi_reduction <add>, %150, %cst_52 [1] : vector<8x20xf32> to vector<8xf32>
    %152 = vector.shape_cast %151 : vector<8xf32> to vector<8x1xf32>
    %153 = arith.mulf %150, %148 : vector<8x20xf32>
    %cst_53 = arith.constant dense<0.000000e+00> : vector<8xf32>
    %154 = vector.multi_reduction <add>, %153, %cst_53 [1] : vector<8x20xf32> to vector<8xf32>
    %155 = vector.shape_cast %154 : vector<8xf32> to vector<8x1xf32>
    %cst_54 = arith.constant 0.000000e+00 : f32
    %156 = vector.broadcast %cst_54 : f32 to vector<8x20xf32>
    %157 = vector.extract_strided_slice %5 {offsets = [0, 0], sizes = [1, 20], strides = [1, 1]} : vector<4x22xf32> to vector<1x20xf32>
    %c0_55 = arith.constant 0 : index
    %c0_56 = arith.constant 0 : index
    %c0_57 = arith.constant 0 : index
    %158 = vector.load %arg2[%c0_55, %c0_56, %c0_57] : memref<20x8x1xf32, #tpu.memory_space<vmem>>, vector<1x8x1xf32>
    %159 = vector.shape_cast %158 : vector<1x8x1xf32> to vector<8x1xf32>
    %160 = vector.broadcast %159 : vector<8x1xf32> to vector<8x20xf32>
    %161 = vector.broadcast %157 : vector<1x20xf32> to vector<8x20xf32>
    %162 = arith.mulf %160, %161 : vector<8x20xf32>
    %163 = arith.addf %156, %162 : vector<8x20xf32>
    %164 = vector.extract_strided_slice %5 {offsets = [1, 0], sizes = [1, 20], strides = [1, 1]} : vector<4x22xf32> to vector<1x20xf32>
    %c5_58 = arith.constant 5 : index
    %c0_59 = arith.constant 0 : index
    %c0_60 = arith.constant 0 : index
    %165 = vector.load %arg2[%c5_58, %c0_59, %c0_60] : memref<20x8x1xf32, #tpu.memory_space<vmem>>, vector<1x8x1xf32>
    %166 = vector.shape_cast %165 : vector<1x8x1xf32> to vector<8x1xf32>
    %167 = vector.broadcast %166 : vector<8x1xf32> to vector<8x20xf32>
    %168 = vector.broadcast %164 : vector<1x20xf32> to vector<8x20xf32>
    %169 = arith.mulf %167, %168 : vector<8x20xf32>
    %170 = arith.addf %163, %169 : vector<8x20xf32>
    %171 = vector.extract_strided_slice %5 {offsets = [2, 0], sizes = [1, 20], strides = [1, 1]} : vector<4x22xf32> to vector<1x20xf32>
    %c10_61 = arith.constant 10 : index
    %c0_62 = arith.constant 0 : index
    %c0_63 = arith.constant 0 : index
    %172 = vector.load %arg2[%c10_61, %c0_62, %c0_63] : memref<20x8x1xf32, #tpu.memory_space<vmem>>, vector<1x8x1xf32>
    %173 = vector.shape_cast %172 : vector<1x8x1xf32> to vector<8x1xf32>
    %174 = vector.broadcast %173 : vector<8x1xf32> to vector<8x20xf32>
    %175 = vector.broadcast %171 : vector<1x20xf32> to vector<8x20xf32>
    %176 = arith.mulf %174, %175 : vector<8x20xf32>
    %177 = arith.addf %170, %176 : vector<8x20xf32>
    %178 = vector.extract_strided_slice %5 {offsets = [3, 0], sizes = [1, 20], strides = [1, 1]} : vector<4x22xf32> to vector<1x20xf32>
    %c15_64 = arith.constant 15 : index
    %c0_65 = arith.constant 0 : index
    %c0_66 = arith.constant 0 : index
    %179 = vector.load %arg2[%c15_64, %c0_65, %c0_66] : memref<20x8x1xf32, #tpu.memory_space<vmem>>, vector<1x8x1xf32>
    %180 = vector.shape_cast %179 : vector<1x8x1xf32> to vector<8x1xf32>
    %181 = vector.broadcast %180 : vector<8x1xf32> to vector<8x20xf32>
    %182 = vector.broadcast %178 : vector<1x20xf32> to vector<8x20xf32>
    %183 = arith.mulf %181, %182 : vector<8x20xf32>
    %184 = arith.addf %177, %183 : vector<8x20xf32>
    %185 = vector.extract_strided_slice %3 {offsets = [0, 1], sizes = [1, 20], strides = [1, 1]} : vector<4x22xf32> to vector<1x20xf32>
    %c1_67 = arith.constant 1 : index
    %c0_68 = arith.constant 0 : index
    %c0_69 = arith.constant 0 : index
    %186 = vector.load %arg2[%c1_67, %c0_68, %c0_69] : memref<20x8x1xf32, #tpu.memory_space<vmem>>, vector<1x8x1xf32>
    %187 = vector.shape_cast %186 : vector<1x8x1xf32> to vector<8x1xf32>
    %188 = vector.broadcast %187 : vector<8x1xf32> to vector<8x20xf32>
    %189 = vector.broadcast %185 : vector<1x20xf32> to vector<8x20xf32>
    %190 = arith.mulf %188, %189 : vector<8x20xf32>
    %191 = arith.addf %184, %190 : vector<8x20xf32>
    %192 = vector.extract_strided_slice %3 {offsets = [1, 1], sizes = [1, 20], strides = [1, 1]} : vector<4x22xf32> to vector<1x20xf32>
    %c6_70 = arith.constant 6 : index
    %c0_71 = arith.constant 0 : index
    %c0_72 = arith.constant 0 : index
    %193 = vector.load %arg2[%c6_70, %c0_71, %c0_72] : memref<20x8x1xf32, #tpu.memory_space<vmem>>, vector<1x8x1xf32>
    %194 = vector.shape_cast %193 : vector<1x8x1xf32> to vector<8x1xf32>
    %195 = vector.broadcast %194 : vector<8x1xf32> to vector<8x20xf32>
    %196 = vector.broadcast %192 : vector<1x20xf32> to vector<8x20xf32>
    %197 = arith.mulf %195, %196 : vector<8x20xf32>
    %198 = arith.addf %191, %197 : vector<8x20xf32>
    %199 = vector.extract_strided_slice %3 {offsets = [2, 1], sizes = [1, 20], strides = [1, 1]} : vector<4x22xf32> to vector<1x20xf32>
    %c11_73 = arith.constant 11 : index
    %c0_74 = arith.constant 0 : index
    %c0_75 = arith.constant 0 : index
    %200 = vector.load %arg2[%c11_73, %c0_74, %c0_75] : memref<20x8x1xf32, #tpu.memory_space<vmem>>, vector<1x8x1xf32>
    %201 = vector.shape_cast %200 : vector<1x8x1xf32> to vector<8x1xf32>
    %202 = vector.broadcast %201 : vector<8x1xf32> to vector<8x20xf32>
    %203 = vector.broadcast %199 : vector<1x20xf32> to vector<8x20xf32>
    %204 = arith.mulf %202, %203 : vector<8x20xf32>
    %205 = arith.addf %198, %204 : vector<8x20xf32>
    %206 = vector.extract_strided_slice %3 {offsets = [3, 1], sizes = [1, 20], strides = [1, 1]} : vector<4x22xf32> to vector<1x20xf32>
    %c16_76 = arith.constant 16 : index
    %c0_77 = arith.constant 0 : index
    %c0_78 = arith.constant 0 : index
    %207 = vector.load %arg2[%c16_76, %c0_77, %c0_78] : memref<20x8x1xf32, #tpu.memory_space<vmem>>, vector<1x8x1xf32>
    %208 = vector.shape_cast %207 : vector<1x8x1xf32> to vector<8x1xf32>
    %209 = vector.broadcast %208 : vector<8x1xf32> to vector<8x20xf32>
    %210 = vector.broadcast %206 : vector<1x20xf32> to vector<8x20xf32>
    %211 = arith.mulf %209, %210 : vector<8x20xf32>
    %212 = arith.addf %205, %211 : vector<8x20xf32>
    %213 = vector.extract_strided_slice %5 {offsets = [0, 1], sizes = [1, 20], strides = [1, 1]} : vector<4x22xf32> to vector<1x20xf32>
    %c2_79 = arith.constant 2 : index
    %c0_80 = arith.constant 0 : index
    %c0_81 = arith.constant 0 : index
    %214 = vector.load %arg2[%c2_79, %c0_80, %c0_81] : memref<20x8x1xf32, #tpu.memory_space<vmem>>, vector<1x8x1xf32>
    %215 = vector.shape_cast %214 : vector<1x8x1xf32> to vector<8x1xf32>
    %216 = vector.broadcast %215 : vector<8x1xf32> to vector<8x20xf32>
    %217 = vector.broadcast %213 : vector<1x20xf32> to vector<8x20xf32>
    %218 = arith.mulf %216, %217 : vector<8x20xf32>
    %219 = arith.addf %212, %218 : vector<8x20xf32>
    %220 = vector.extract_strided_slice %5 {offsets = [1, 1], sizes = [1, 20], strides = [1, 1]} : vector<4x22xf32> to vector<1x20xf32>
    %c7_82 = arith.constant 7 : index
    %c0_83 = arith.constant 0 : index
    %c0_84 = arith.constant 0 : index
    %221 = vector.load %arg2[%c7_82, %c0_83, %c0_84] : memref<20x8x1xf32, #tpu.memory_space<vmem>>, vector<1x8x1xf32>
    %222 = vector.shape_cast %221 : vector<1x8x1xf32> to vector<8x1xf32>
    %223 = vector.broadcast %222 : vector<8x1xf32> to vector<8x20xf32>
    %224 = vector.broadcast %220 : vector<1x20xf32> to vector<8x20xf32>
    %225 = arith.mulf %223, %224 : vector<8x20xf32>
    %226 = arith.addf %219, %225 : vector<8x20xf32>
    %227 = vector.extract_strided_slice %5 {offsets = [2, 1], sizes = [1, 20], strides = [1, 1]} : vector<4x22xf32> to vector<1x20xf32>
    %c12_85 = arith.constant 12 : index
    %c0_86 = arith.constant 0 : index
    %c0_87 = arith.constant 0 : index
    %228 = vector.load %arg2[%c12_85, %c0_86, %c0_87] : memref<20x8x1xf32, #tpu.memory_space<vmem>>, vector<1x8x1xf32>
    %229 = vector.shape_cast %228 : vector<1x8x1xf32> to vector<8x1xf32>
    %230 = vector.broadcast %229 : vector<8x1xf32> to vector<8x20xf32>
    %231 = vector.broadcast %227 : vector<1x20xf32> to vector<8x20xf32>
    %232 = arith.mulf %230, %231 : vector<8x20xf32>
    %233 = arith.addf %226, %232 : vector<8x20xf32>
    %234 = vector.extract_strided_slice %5 {offsets = [3, 1], sizes = [1, 20], strides = [1, 1]} : vector<4x22xf32> to vector<1x20xf32>
    %c17_88 = arith.constant 17 : index
    %c0_89 = arith.constant 0 : index
    %c0_90 = arith.constant 0 : index
    %235 = vector.load %arg2[%c17_88, %c0_89, %c0_90] : memref<20x8x1xf32, #tpu.memory_space<vmem>>, vector<1x8x1xf32>
    %236 = vector.shape_cast %235 : vector<1x8x1xf32> to vector<8x1xf32>
    %237 = vector.broadcast %236 : vector<8x1xf32> to vector<8x20xf32>
    %238 = vector.broadcast %234 : vector<1x20xf32> to vector<8x20xf32>
    %239 = arith.mulf %237, %238 : vector<8x20xf32>
    %240 = arith.addf %233, %239 : vector<8x20xf32>
    %241 = vector.extract_strided_slice %3 {offsets = [0, 2], sizes = [1, 20], strides = [1, 1]} : vector<4x22xf32> to vector<1x20xf32>
    %c3_91 = arith.constant 3 : index
    %c0_92 = arith.constant 0 : index
    %c0_93 = arith.constant 0 : index
    %242 = vector.load %arg2[%c3_91, %c0_92, %c0_93] : memref<20x8x1xf32, #tpu.memory_space<vmem>>, vector<1x8x1xf32>
    %243 = vector.shape_cast %242 : vector<1x8x1xf32> to vector<8x1xf32>
    %244 = vector.broadcast %243 : vector<8x1xf32> to vector<8x20xf32>
    %245 = vector.broadcast %241 : vector<1x20xf32> to vector<8x20xf32>
    %246 = arith.mulf %244, %245 : vector<8x20xf32>
    %247 = arith.addf %240, %246 : vector<8x20xf32>
    %248 = vector.extract_strided_slice %3 {offsets = [1, 2], sizes = [1, 20], strides = [1, 1]} : vector<4x22xf32> to vector<1x20xf32>
    %c8_94 = arith.constant 8 : index
    %c0_95 = arith.constant 0 : index
    %c0_96 = arith.constant 0 : index
    %249 = vector.load %arg2[%c8_94, %c0_95, %c0_96] : memref<20x8x1xf32, #tpu.memory_space<vmem>>, vector<1x8x1xf32>
    %250 = vector.shape_cast %249 : vector<1x8x1xf32> to vector<8x1xf32>
    %251 = vector.broadcast %250 : vector<8x1xf32> to vector<8x20xf32>
    %252 = vector.broadcast %248 : vector<1x20xf32> to vector<8x20xf32>
    %253 = arith.mulf %251, %252 : vector<8x20xf32>
    %254 = arith.addf %247, %253 : vector<8x20xf32>
    %255 = vector.extract_strided_slice %3 {offsets = [2, 2], sizes = [1, 20], strides = [1, 1]} : vector<4x22xf32> to vector<1x20xf32>
    %c13_97 = arith.constant 13 : index
    %c0_98 = arith.constant 0 : index
    %c0_99 = arith.constant 0 : index
    %256 = vector.load %arg2[%c13_97, %c0_98, %c0_99] : memref<20x8x1xf32, #tpu.memory_space<vmem>>, vector<1x8x1xf32>
    %257 = vector.shape_cast %256 : vector<1x8x1xf32> to vector<8x1xf32>
    %258 = vector.broadcast %257 : vector<8x1xf32> to vector<8x20xf32>
    %259 = vector.broadcast %255 : vector<1x20xf32> to vector<8x20xf32>
    %260 = arith.mulf %258, %259 : vector<8x20xf32>
    %261 = arith.addf %254, %260 : vector<8x20xf32>
    %262 = vector.extract_strided_slice %3 {offsets = [3, 2], sizes = [1, 20], strides = [1, 1]} : vector<4x22xf32> to vector<1x20xf32>
    %c18_100 = arith.constant 18 : index
    %c0_101 = arith.constant 0 : index
    %c0_102 = arith.constant 0 : index
    %263 = vector.load %arg2[%c18_100, %c0_101, %c0_102] : memref<20x8x1xf32, #tpu.memory_space<vmem>>, vector<1x8x1xf32>
    %264 = vector.shape_cast %263 : vector<1x8x1xf32> to vector<8x1xf32>
    %265 = vector.broadcast %264 : vector<8x1xf32> to vector<8x20xf32>
    %266 = vector.broadcast %262 : vector<1x20xf32> to vector<8x20xf32>
    %267 = arith.mulf %265, %266 : vector<8x20xf32>
    %268 = arith.addf %261, %267 : vector<8x20xf32>
    %269 = vector.extract_strided_slice %5 {offsets = [0, 2], sizes = [1, 20], strides = [1, 1]} : vector<4x22xf32> to vector<1x20xf32>
    %c4_103 = arith.constant 4 : index
    %c0_104 = arith.constant 0 : index
    %c0_105 = arith.constant 0 : index
    %270 = vector.load %arg2[%c4_103, %c0_104, %c0_105] : memref<20x8x1xf32, #tpu.memory_space<vmem>>, vector<1x8x1xf32>
    %271 = vector.shape_cast %270 : vector<1x8x1xf32> to vector<8x1xf32>
    %272 = vector.broadcast %271 : vector<8x1xf32> to vector<8x20xf32>
    %273 = vector.broadcast %269 : vector<1x20xf32> to vector<8x20xf32>
    %274 = arith.mulf %272, %273 : vector<8x20xf32>
    %275 = arith.addf %268, %274 : vector<8x20xf32>
    %276 = vector.extract_strided_slice %5 {offsets = [1, 2], sizes = [1, 20], strides = [1, 1]} : vector<4x22xf32> to vector<1x20xf32>
    %c9_106 = arith.constant 9 : index
    %c0_107 = arith.constant 0 : index
    %c0_108 = arith.constant 0 : index
    %277 = vector.load %arg2[%c9_106, %c0_107, %c0_108] : memref<20x8x1xf32, #tpu.memory_space<vmem>>, vector<1x8x1xf32>
    %278 = vector.shape_cast %277 : vector<1x8x1xf32> to vector<8x1xf32>
    %279 = vector.broadcast %278 : vector<8x1xf32> to vector<8x20xf32>
    %280 = vector.broadcast %276 : vector<1x20xf32> to vector<8x20xf32>
    %281 = arith.mulf %279, %280 : vector<8x20xf32>
    %282 = arith.addf %275, %281 : vector<8x20xf32>
    %283 = vector.extract_strided_slice %5 {offsets = [2, 2], sizes = [1, 20], strides = [1, 1]} : vector<4x22xf32> to vector<1x20xf32>
    %c14_109 = arith.constant 14 : index
    %c0_110 = arith.constant 0 : index
    %c0_111 = arith.constant 0 : index
    %284 = vector.load %arg2[%c14_109, %c0_110, %c0_111] : memref<20x8x1xf32, #tpu.memory_space<vmem>>, vector<1x8x1xf32>
    %285 = vector.shape_cast %284 : vector<1x8x1xf32> to vector<8x1xf32>
    %286 = vector.broadcast %285 : vector<8x1xf32> to vector<8x20xf32>
    %287 = vector.broadcast %283 : vector<1x20xf32> to vector<8x20xf32>
    %288 = arith.mulf %286, %287 : vector<8x20xf32>
    %289 = arith.addf %282, %288 : vector<8x20xf32>
    %290 = vector.extract_strided_slice %5 {offsets = [3, 2], sizes = [1, 20], strides = [1, 1]} : vector<4x22xf32> to vector<1x20xf32>
    %c19_112 = arith.constant 19 : index
    %c0_113 = arith.constant 0 : index
    %c0_114 = arith.constant 0 : index
    %291 = vector.load %arg2[%c19_112, %c0_113, %c0_114] : memref<20x8x1xf32, #tpu.memory_space<vmem>>, vector<1x8x1xf32>
    %292 = vector.shape_cast %291 : vector<1x8x1xf32> to vector<8x1xf32>
    %293 = vector.broadcast %292 : vector<8x1xf32> to vector<8x20xf32>
    %294 = vector.broadcast %290 : vector<1x20xf32> to vector<8x20xf32>
    %295 = arith.mulf %293, %294 : vector<8x20xf32>
    %296 = arith.addf %289, %295 : vector<8x20xf32>
    %297 = vector.broadcast %1 : vector<8x1xf32> to vector<8x20xf32>
    %298 = arith.addf %296, %297 : vector<8x20xf32>
    %299 = vector.broadcast %0 : vector<1x20xf32> to vector<8x20xf32>
    %300 = arith.mulf %298, %299 : vector<8x20xf32>
    %cst_115 = arith.constant dense<0.000000e+00> : vector<8xf32>
    %301 = vector.multi_reduction <add>, %300, %cst_115 [1] : vector<8x20xf32> to vector<8xf32>
    %302 = vector.shape_cast %301 : vector<8xf32> to vector<8x1xf32>
    %303 = arith.mulf %300, %298 : vector<8x20xf32>
    %cst_116 = arith.constant dense<0.000000e+00> : vector<8xf32>
    %304 = vector.multi_reduction <add>, %303, %cst_116 [1] : vector<8x20xf32> to vector<8xf32>
    %305 = vector.shape_cast %304 : vector<8xf32> to vector<8x1xf32>
    %306 = arith.maximumf %148, %298 : vector<8x20xf32>
    %307 = arith.addf %152, %302 : vector<8x1xf32>
    %308 = arith.addf %155, %305 : vector<8x1xf32>
    %c0_117 = arith.constant 0 : index
    %c0_118 = arith.constant 0 : index
    %c0_119 = arith.constant 0 : index
    %309 = vector.load %arg5[%c0_117, %c0_118, %c0_119] : memref<1x8x20xf32, #tpu.memory_space<vmem>>, vector<1x8x20xf32>
    %310 = vector.shape_cast %309 : vector<1x8x20xf32> to vector<8x20xf32>
    %311 = vector.shape_cast %306 : vector<8x20xf32> to vector<1x8x20xf32>
    tpu.vector_store %arg5[%c0_117, %c0_118, %c0_119], %311 {strides = array<i32>} : memref<1x8x20xf32, #tpu.memory_space<vmem>>, vector<1x8x20xf32>,
    %c0_120 = arith.constant 0 : index
    %c0_121 = arith.constant 0 : index
    %c0_122 = arith.constant 0 : index
    %312 = vector.load %arg6[%c0_120, %c0_121, %c0_122] : memref<1x16x1xf32, #tpu.memory_space<vmem>>, vector<1x8x1xf32>
    %313 = vector.shape_cast %312 : vector<1x8x1xf32> to vector<8x1xf32>
    %314 = vector.shape_cast %307 : vector<8x1xf32> to vector<1x8x1xf32>
    tpu.vector_store %arg6[%c0_120, %c0_121, %c0_122], %314 {strides = array<i32>} : memref<1x16x1xf32, #tpu.memory_space<vmem>>, vector<1x8x1xf32>,
    %c0_123 = arith.constant 0 : index
    %c8_124 = arith.constant 8 : index
    %c0_125 = arith.constant 0 : index
    %315 = vector.load %arg6[%c0_123, %c8_124, %c0_125] : memref<1x16x1xf32, #tpu.memory_space<vmem>>, vector<1x8x1xf32>
    %316 = vector.shape_cast %315 : vector<1x8x1xf32> to vector<8x1xf32>
    %317 = vector.shape_cast %308 : vector<8x1xf32> to vector<1x8x1xf32>
    tpu.vector_store %arg6[%c0_123, %c8_124, %c0_125], %317 {strides = array<i32>} : memref<1x16x1xf32, #tpu.memory_space<vmem>>, vector<1x8x1xf32>,
    return
  }
  func.func @transform_0(%arg0: i32) -> (i32, i32, i32, i32) {
    %c0_i32 = arith.constant 0 : i32
    %c0_i32_0 = arith.constant 0 : i32
    %c0_i32_1 = arith.constant 0 : i32
    %c0_i32_2 = arith.constant 0 : i32
    return %arg0, %c0_i32, %c0_i32_0, %c0_i32_1 : i32, i32, i32, i32
  }
  func.func @transform_1(%arg0: i32) -> (i32, i32, i32) {
    %c0_i32 = arith.constant 0 : i32
    %c0_i32_0 = arith.constant 0 : i32
    %c0_i32_1 = arith.constant 0 : i32
    %c0_i32_2 = arith.constant 0 : i32
    return %c0_i32, %c0_i32_0, %c0_i32_1 : i32, i32, i32
  }
  func.func @transform_2(%arg0: i32) -> (i32, i32) {
    %c0_i32 = arith.constant 0 : i32
    %c0_i32_0 = arith.constant 0 : i32
    %c0_i32_1 = arith.constant 0 : i32
    return %c0_i32, %c0_i32_0 : i32, i32
  }
  func.func @transform_3(%arg0: i32) -> (i32, i32) {
    %c0_i32 = arith.constant 0 : i32
    %c0_i32_0 = arith.constant 0 : i32
    %c0_i32_1 = arith.constant 0 : i32
    return %c0_i32, %c0_i32_0 : i32, i32
  }
  func.func @transform_4(%arg0: i32) -> (i32, i32, i32) {
    %c0_i32 = arith.constant 0 : i32
    %c0_i32_0 = arith.constant 0 : i32
    %c0_i32_1 = arith.constant 0 : i32
    return %arg0, %c0_i32, %c0_i32_0 : i32, i32, i32
  }
  func.func @transform_5(%arg0: i32) -> (i32, i32, i32) {
    %c0_i32 = arith.constant 0 : i32
    %c0_i32_0 = arith.constant 0 : i32
    %c0_i32_1 = arith.constant 0 : i32
    return %arg0, %c0_i32, %c0_i32_0 : i32, i32, i32
  }
}

</mosaic_0001>

<bundles_post_ra>
// kernel: tpu_custom_call.1
= control target key start
LH: loop header
LB: loop body
LE: loop exit
PB: predicated region body
PF: predicated region fallthrough
CT: control target
= control target key end

     0   :  { %v494_v2 = vmov 0   ;;  %s714_s0 = inlined_call_operand.vmem [shape: f32[1,2,4,22], index: 0, kind: input, shape index: {}]   ;;  %s715_s1 = inlined_call_operand.vmem [shape: f32[20,8,1], index: 1, kind: input, shape index: {}]   ;;  %s716_s2 = inlined_call_operand.vmem [shape: f32[8,1], index: 2, kind: input, shape index: {}]   ;;  %s717_s3 = inlined_call_operand.vmem [shape: f32[1,20], index: 3, kind: input, shape index: {}]   ;;  %s718_s4 = inlined_call_operand.hbm [shape: f32[1,8,20], index: 4, kind: output, shape index: {0}]   ;;  %s719_s5 = inlined_call_operand.vmem [shape: f32[1,16,1], index: 5, kind: output, shape index: {1}]  }
   0x1   :  { %v449_v0 = vld [vmem:[%s715_s1 + $0x58] sm:$0xff]  ;;  %v447_v1 = vld [vmem:[%s715_s1 + $0x8] sm:$0xff]  ;;  %469 = vset.pattern.permute.xlu1 %v494_v2  ;;  %468 = vset.pattern.permute.xlu0 %v494_v2  ;;  %v450_v3 = vld [vmem:[%s715_s1 + $0x80] sm:$0xff] }
   0x2   :  { %106 = vperm.xlu1 %469, %v449_v0   ;;  %80 = vperm.xlu0 %468, %v447_v1   ;;  %v448_v4 = vld [vmem:[%s715_s1 + $0x30] sm:$0xff]  ;;  %v452_v5 = vld [vmem:[%s715_s1 + $0x38] sm:$0xff] }
   0x3   :  { %v451_v6 = vld [vmem:[%s715_s1 + $0x10] sm:$0xff] }
   0x6   :  { %119 = vperm.xlu1 %469, %v450_v3   ;;  %93 = vperm.xlu0 %468, %v448_v4  }
   0x7   :  { %11 = vsyncpa [#allocation3], 0  ;;  %v454_v7 = vld [vmem:[%s715_s1 + $0x88] sm:$0xff]  ;;  %v453_v8 = vld [vmem:[%s715_s1 + $0x60] sm:$0xff]  ;;  %v31_v22 = vlaneseq  ;;  %vm297_vm0 = vcmask 162816   ;;  %s497_s15 = smov [#allocation2]  }
   0x8   :  { %v456_v9 = vld [vmem:[%s715_s1 + $0x40] sm:$0xff]  ;;  %v455_v10 = vld [vmem:[%s715_s1 + $0x18] sm:$0xff]  ;;  %v458_v11 = vld [vmem:[%s715_s1 + $0x90] sm:$0xff]  ;;  %s431_s16 = sshll.u32 %s497_s15, 4  ;;  %s432_s16 = int_to_ptr.vmem [resolvable:$true] %s431_s16 }
   0x9   :  { %v457_v12 = vld [vmem:[%s715_s1 + $0x68] sm:$0xff]  ;;  %v459_v14 = vld [vmem:[%s715_s1 + $0x20] sm:$0xff]  ;;  %v462_v15 = vld [vmem:[%s715_s1 + $0x98] sm:$0xff]  ;;  %v32_v23 = vshrl.u32 %v31_v22, 7  ;;  %p475_p1 = scmp.lt.s32.totalorder %s432_s16, %s432_s16 }
   0xa   :  { %145 = vperm.xlu1 %469, %v452_v5   ;;  %132 = vperm.xlu0 %468, %v451_v6   ;;  %v460_v13 = vld [vmem:[%s715_s1 + $0x48] sm:$0xff]  ;;  %v461_v16 = vld [vmem:[%s715_s1 + $0x70] sm:$0xff]  ;;  %v25_v18 = vld [vmem:[%s715_s1] sm:$0xff] }
   0xb   :  { %v444_v17 = vld [vmem:[%s715_s1 + $0x28] sm:$0xff]  ;;  %v446_v19 = vld [vmem:[%s715_s1 + $0x78] sm:$0xff]  ;;  %v445_v20 = vld [vmem:[%s715_s1 + $0x50] sm:$0xff]  ;;  %v59_v24 = vsub.s32 2, %v32_v23  ;;  %v33_v25 = vsub.s32 0, %v32_v23  ;;  %v72_v28 = vsub.s32 3, %v32_v23 }
   0xc   :  { %v21_v21 = vld [vmem:[%s716_s2] sm:$0xff]  ;;  %v46_v29 = vsub.s32 1, %v32_v23  ;;  %s496_s1 = smov 126  }
   0xd   :  { %v22_v26 = vld [vmem:[%s714_s0] sm:$0xf]  ;;  %v443_v27 = vld [vmem:[%s714_s0 + $0x4] sm:$0xf]  ;;  %s495_s0 = smov 127  }
   0xe   :  { %171 = vperm.xlu1 %469, %v454_v7   ;;  %158 = vperm.xlu0 %468, %v453_v8   ;;  %v597_v30 = vrot.slane %v443_v27, %v59_v24  ;;  %v599_v31 = vrot.slane %v22_v26, %v33_v25  ;;  %v601_v32 = vrot.slane %v443_v27, %v33_v25 }
   0xf   :  { %v603_v33 = vrot.slane %v22_v26, %v59_v24  ;;  %v605_v36 = vrot.slane %v443_v27, %v72_v28  ;;  %v607_v37 = vrot.slane %v22_v26, %v46_v29  ;;  %v616_v41 = vrot.slane %v443_v27, %v46_v29 }
  0x10   :  { %v620_v45 = vrot.slane %v22_v26, %v72_v28 }
  0x12   :  { %197 = vperm.xlu1 %469, %v456_v9   ;;  %184 = vperm.xlu0 %468, %v455_v10  }
  0x16   :  { %223 = vperm.xlu1 %469, %v458_v11   ;;  %210 = vperm.xlu0 %468, %v457_v12  }
  0x1a   :  { %249 = vperm.xlu1 %469, %v460_v13   ;;  %236 = vperm.xlu0 %468, %v459_v14  }
  0x1e   :  { %275 = vperm.xlu1 %469, %v462_v15   ;;  %262 = vperm.xlu0 %468, %v461_v16  }
  0x22   :  { %41 = vperm.xlu1 %469, %v444_v17   ;;  %28 = vperm.xlu0 %468, %v25_v18  }
  0x26   :  { %67 = vperm.xlu1 %469, %v446_v19   ;;  %54 = vperm.xlu0 %468, %v445_v20  }
  0x2a   :  { %286 = vperm.xlu0 %468, %v21_v21  }
  0x81   :  { %v107_v34 = vpop.permute.xlu1 %106  ;;  %v81_v35 = vpop.permute.xlu0 %80 }
  0x82   :  { %v610_v38 = vmul.f32 %v597_v30, %v107_v34  ;;  %v613_v39 = vmul.f32 %v601_v32, %v81_v35  ;;  %v313_v40 = vmul.f32 %v81_v35, %v599_v31  ;;  %v325_v42 = vmul.f32 %v107_v34, %v603_v33 }
  0x84   :  { %315 = vrot.lane.b32.xlu0 %v313_v40, %s495_s0 }
  0x85   :  { %v120_v43 = vpop.permute.xlu1 %119  ;;  %v94_v44 = vpop.permute.xlu0 %93 }
  0x86   :  { %v623_v46 = vmul.f32 %v605_v36, %v120_v43  ;;  %v626_v47 = vmul.f32 %v616_v41, %v94_v44  ;;  %v319_v48 = vmul.f32 %v94_v44, %v607_v37  ;;  %v331_v51 = vmul.f32 %v120_v43, %v620_v45 }
  0x88   :  { %321 = vrot.lane.b32.xlu1 %v319_v48, %s495_s0  ;;  %327 = vrot.lane.b32.xlu0 %v325_v42, %s495_s0 }
  0x89   :  { %v146_v49 = vpop.permute.xlu1 %145  ;;  %v133_v50 = vpop.permute.xlu0 %132 }
  0x8a   :  { %v135_v52 = vmul.f32 %v133_v50, %v599_v31  ;;  %v148_v55 = vmul.f32 %v146_v49, %v607_v37  ;;  %v337_v56 = vmul.f32 %v133_v50, %v601_v32  ;;  %v343_v59 = vmul.f32 %v146_v49, %v616_v41 }
  0x8c   :  { %333 = vrot.lane.b32.xlu1 %v331_v51, %s495_s0  ;;  %137 = vrot.lane.b32.xlu0 %v135_v52, %s495_s0 }
  0x8d   :  { %v172_v53 = vpop.permute.xlu1 %171  ;;  %v159_v54 = vpop.permute.xlu0 %158 }
  0x8e   :  { %v161_v60 = vmul.f32 %v159_v54, %v603_v33  ;;  %v174_v63 = vmul.f32 %v172_v53, %v620_v45  ;;  %v349_v0 = vmul.f32 %v159_v54, %v597_v30  ;;  %v355_v3 = vmul.f32 %v172_v53, %v605_v36 }
  0x90   :  { %339 = vrot.lane.b32.xlu1 %v337_v56, %s495_s0  ;;  %150 = vrot.lane.b32.xlu0 %v148_v55, %s495_s0 }
  0x91   :  { %v198_v57 = vpop.permute.xlu1 %197  ;;  %v185_v58 = vpop.permute.xlu0 %184 }
  0x92   :  { %v187_v4 = vmul.f32 %v185_v58, %v601_v32  ;;  %v200_v7 = vmul.f32 %v198_v57, %v616_v41  ;;  %v361_v8 = vmul.f32 %v185_v58, %v599_v31  ;;  %v367_v9 = vmul.f32 %v198_v57, %v607_v37 }
  0x94   :  { %345 = vrot.lane.b32.xlu1 %v343_v59, %s495_s0  ;;  %163 = vrot.lane.b32.xlu0 %v161_v60, %s495_s0 }
  0x95   :  { %v224_v61 = vpop.permute.xlu1 %223  ;;  %v211_v62 = vpop.permute.xlu0 %210 }
  0x96   :  { %v213_v10 = vmul.f32 %v211_v62, %v597_v30  ;;  %v226_v21 = vmul.f32 %v224_v61, %v605_v36  ;;  %v373_v22 = vmul.f32 %v211_v62, %v603_v33  ;;  %v379_v29 = vmul.f32 %v224_v61, %v620_v45 }
  0x98   :  { %351 = vrot.lane.b32.xlu1 %v349_v0, %s495_s0  ;;  %176 = vrot.lane.b32.xlu0 %v174_v63, %s495_s0 }
  0x99   :  { %v250_v1 = vpop.permute.xlu1 %249  ;;  %v237_v2 = vpop.permute.xlu0 %236 }
  0x9a   :  { %v239_v34 = vmul.f32 %v237_v2, %v599_v31  ;;  %v391_v43 = vmul.f32 %v250_v1, %v616_v41  ;;  %v385_v44 = vmul.f32 %v237_v2, %v601_v32  ;;  %v252_v49 = vmul.f32 %v250_v1, %v607_v37 }
  0x9c   :  { %357 = vrot.lane.b32.xlu1 %v355_v3, %s495_s0  ;;  %189 = vrot.lane.b32.xlu0 %v187_v4, %s495_s0 }
  0x9d   :  { %v276_v5 = vpop.permute.xlu1 %275  ;;  %v263_v6 = vpop.permute.xlu0 %262 }
  0xa0   :  { %363 = vrot.lane.b32.xlu1 %v361_v8, %s496_s1  ;;  %202 = vrot.lane.b32.xlu0 %v200_v7, %s495_s0 }
  0xa1   :  { %v42_v11 = vpop.permute.xlu1 %41  ;;  %v29_v12 = vpop.permute.xlu0 %28 }
  0xa2   :  { %v48_v13 = vmul.f32 %v607_v37, %v42_v11  ;;  %v307_v14 = vmul.f32 %v616_v41, %v42_v11  ;;  %v35_v15 = vmul.f32 %v599_v31, %v29_v12  ;;  %v305_v16 = vmul.f32 %v601_v32, %v29_v12 }
  0xa3   :  { %v403_v32 = vmul.f32 %v276_v5, %v605_v36  ;;  %v265_v41 = vmul.f32 %v263_v6, %v603_v33 }
  0xa4   :  { %v49_v17 = vadd.f32 %v48_v13, %v35_v15  ;;  %v308_v18 = vadd.f32 %v307_v14, %v305_v16  ;;  %369 = vrot.lane.b32.xlu1 %v367_v9, %s496_s1  ;;  %215 = vrot.lane.b32.xlu0 %v213_v10, %s495_s0 }
  0xa5   :  { %v68_v19 = vpop.permute.xlu1 %67  ;;  %v55_v20 = vpop.permute.xlu0 %54 }
  0xa6   :  { %v61_v23 = vmul.f32 %v603_v33, %v55_v20  ;;  %v309_v24 = vmul.f32 %v597_v30, %v55_v20  ;;  %v74_v25 = vmul.f32 %v620_v45, %v68_v19  ;;  %v311_v26 = vmul.f32 %v605_v36, %v68_v19 }
  0xa8   :  { %v62_v27 = vadd.f32 %v61_v23, %v49_v17  ;;  %v310_v28 = vadd.f32 %v309_v24, %v308_v18  ;;  %375 = vrot.lane.b32.xlu1 %v373_v22, %s496_s1  ;;  %228 = vrot.lane.b32.xlu0 %v226_v21, %s495_s0 }
  0xa9   :  { %v287_v37 = vpop.permute.xlu0 %286 }
  0xaa   :  { %v75_v35 = vadd.f32 %v74_v25, %v62_v27  ;;  %v312_v40 = vadd.f32 %v311_v26, %v310_v28 }
  0xac   :  { %v88_v42 = vadd.f32 %v613_v39, %v75_v35  ;;  %381 = vrot.lane.b32.xlu1 %v379_v29, %s496_s1  ;;  %241 = vrot.lane.b32.xlu0 %v239_v34, %s496_s1  ;;  %v397_v39 = vmul.f32 %v263_v6, %v597_v30 }
  0xae   :  { %v101_v48 = vadd.f32 %v626_v47, %v88_v42 }
  0xb0   :  { %387 = vrot.lane.b32.xlu1 %v385_v44, %s496_s1  ;;  %393 = vrot.lane.b32.xlu0 %v391_v43, %s496_s1  ;;  %v114_v31 = vadd.f32 %v610_v38, %v101_v48  ;;  %v278_v38 = vmul.f32 %v276_v5, %v620_v45 }
  0xb2   :  { %v127_v50 = vadd.f32 %v623_v46, %v114_v31  ;;  %v463_v31 = vld [vmem:[%s717_s3] ss:$0 sm:$0xff]  ;;  %s470_s3 = scalar_lea.vmem %s432_s16, 128 }
  0xb3   :  { %p471_p0 = scmp.ne.s32.totalorder %s432_s16, %s470_s3  ;;  %p476_p2 = scmp.lt.s32.totalorder %s470_s3, %s470_s3 }
  0xb4   :  { %254 = vrot.lane.b32.xlu1 %v252_v49, %s496_s1  ;;  %399 = vrot.lane.b32.xlu0 %v397_v39, %s496_s1 }
  0xb5   :  { %p477_p3 = por %p476_p2, %p475_p1 }
  0xb7   :  { %p478_p4 = pnand %p477_p3, %p471_p0 }
  0xb8   :  { %267 = vrot.lane.b32.xlu1 %v265_v41, %s496_s1  ;;  %405 = vrot.lane.b32.xlu0 %v403_v32, %s496_s1 }
  0xbc   :  { %280 = vrot.lane.b32.xlu1 %v278_v38, %s496_s1 }
  0xf6   :  { %v316_v30 = vpop.permute.xlu0 %315 }
  0xf7   :  { %v318_v56 = vadd.f32 %v316_v30, %v312_v40 }
  0xfa   :  { %v322_v47 = vpop.permute.xlu1 %321  ;;  %v328_v46 = vpop.permute.xlu0 %327 }
  0xfb   :  { %v324_v33 = vadd.f32 %v322_v47, %v318_v56 }
  0xfd   :  { %v330_v59 = vadd.f32 %v328_v46, %v324_v33 }
  0xfe   :  { %v334_v51 = vpop.permute.xlu1 %333  ;;  %v138_v52 = vpop.permute.xlu0 %137 }
  0xff   :  { %v336_v45 = vadd.f32 %v334_v51, %v330_v59  ;;  %v140_v5 = vadd.f32 %v138_v52, %v127_v50 }
 0x102   :  { %v340_v53 = vpop.permute.xlu1 %339  ;;  %v151_v54 = vpop.permute.xlu0 %150 }
 0x103   :  { %v342_v0 = vadd.f32 %v340_v53, %v336_v45  ;;  %v153_v9 = vadd.f32 %v151_v54, %v140_v5 }
 0x106   :  { %v346_v55 = vpop.permute.xlu1 %345  ;;  %v164_v36 = vpop.permute.xlu0 %163 }
 0x107   :  { %v348_v1 = vadd.f32 %v346_v55, %v342_v0  ;;  %v166_v11 = vadd.f32 %v164_v36, %v153_v9 }
 0x10a   :  { %v352_v57 = vpop.permute.xlu1 %351  ;;  %v177_v58 = vpop.permute.xlu0 %176 }
 0x10b   :  { %v354_v4 = vadd.f32 %v352_v57, %v348_v1  ;;  %v179_v15 = vadd.f32 %v177_v58, %v166_v11 }
 0x10e   :  { %v358_v60 = vpop.permute.xlu1 %357  ;;  %v190_v61 = vpop.permute.xlu0 %189 }
 0x10f   :  { %v360_v6 = vadd.f32 %v358_v60, %v354_v4  ;;  %v192_v17 = vadd.f32 %v190_v61, %v179_v15 }
 0x112   :  { %v364_v62 = vpop.permute.xlu1 %363  ;;  %v203_v63 = vpop.permute.xlu0 %202 }
 0x113   :  { %v366_v10 = vadd.f32 %v364_v62, %v360_v6  ;;  %v205_v21 = vadd.f32 %v203_v63, %v192_v17 }
 0x116   :  { %v370_v2 = vpop.permute.xlu1 %369  ;;  %v216_v3 = vpop.permute.xlu0 %215 }
 0x117   :  { %v372_v12 = vadd.f32 %v370_v2, %v366_v10  ;;  %v218_v23 = vadd.f32 %v216_v3, %v205_v21 }
 0x11a   :  { %v376_v7 = vpop.permute.xlu1 %375  ;;  %v229_v8 = vpop.permute.xlu0 %228 }
 0x11b   :  { %v378_v16 = vadd.f32 %v376_v7, %v372_v12  ;;  %v231_v27 = vadd.f32 %v229_v8, %v218_v23 }
 0x11e   :  { %v382_v13 = vpop.permute.xlu1 %381  ;;  %v242_v14 = vpop.permute.xlu0 %241 }
 0x11f   :  { %v384_v18 = vadd.f32 %v382_v13, %v378_v16  ;;  %v244_v28 = vadd.f32 %v242_v14, %v231_v27 }
 0x122   :  { %v388_v19 = vpop.permute.xlu1 %387  ;;  %v394_v20 = vpop.permute.xlu0 %393 }
 0x123   :  { %v390_v22 = vadd.f32 %v388_v19, %v384_v18 }
 0x125   :  { %v396_v24 = vadd.f32 %v394_v20, %v390_v22 }
 0x126   :  { %v255_v25 = vpop.permute.xlu1 %254  ;;  %v400_v26 = vpop.permute.xlu0 %399 }
 0x127   :  { %v402_v29 = vadd.f32 %v400_v26, %v396_v24  ;;  %v257_v40 = vadd.f32 %v255_v25, %v244_v28 }
 0x12a   :  { %v268_v34 = vpop.permute.xlu1 %267  ;;  %v406_v35 = vpop.permute.xlu0 %405 }
 0x12b   :  { %v408_v42 = vadd.f32 %v406_v35, %v402_v29  ;;  %v270_v43 = vadd.f32 %v268_v34, %v257_v40 }
 0x12d   :  { %v409_v44 = vadd.f32 %v408_v42, %v287_v37 }
 0x12e   :  { %v281_v48 = vpop.permute.xlu1 %280 }
 0x12f   :  { %v283_v49 = vadd.f32 %v281_v48, %v270_v43  ;;  %v410_v50 = vmul.f32 %v463_v31, %v409_v44 }
 0x131   :  { %v289_v39 = vadd.f32 %v287_v37, %v283_v49  ;;  %v414_v47 = vmul.f32 %v410_v50, %v409_v44  ;;  %v411_v52 = vsel %vm297_vm0, %v410_v50, 0.0 }
 0x133   :  { %v296_v32 = vmul.f32 %v463_v31, %v289_v39  ;;  %v418_v41 = vmax.f32 %v289_v39, %v409_v44  ;;  %v415_v51 = vsel %vm297_vm0, %v414_v47, 0.0 }
 0x135   :  { %v298_v38 = vsel %vm297_vm0, %v296_v32, 0.0  ;;  %v301_v30 = vmul.f32 %v296_v32, %v289_v39  ;;  %421 = vst.msk [vmem:[#allocation2] sm:$0xff] %vm297_vm0, %v418_v41 }
 0x136   :  { %299 = vadd.xlane.f32.xlu1 %v298_v38 }
 0x137   :  { %v302_v46 = vsel %vm297_vm0, %v301_v30, 0.0 }
 0x138   :  { %303 = vadd.xlane.f32.xlu0 %v302_v46 }
 0x13a   :  { %416 = vadd.xlane.f32.xlu1 %v415_v51 }
 0x13c   :  { %412 = vadd.xlane.f32.xlu0 %v411_v52 }
 0x13d   :  { %481 = shalt.err (!%p478_p4)
}
 0x13e   :  { %s482_s19 = scalar_lea.hbm %s718_s4, 128 }
 0x13f   :  { %p483_p5 = scmp.ne.s32.totalorder %s718_s4, %s482_s19  ;;  %p486_p6 = scmp.lt.u32.totalorder %s482_s19, %s718_s4 }
 0x141   :  { %p488_p7 = pnand %p486_p6, %p483_p5 }
 0x143   :  { %491 = shalt.err (!%p488_p7)
}
 0x144   :  { %434 = dma.vmem_to_hbm [thread:$0]  %s432_s16, 128, %s718_s4, [#allocation3]   ;;  %vm422_vm1 = vcmask 7168  }
 0x1c3   :  { %v300_v37 = vpop.xlane.xlu1 %299 }
 0x1c5   :  { %v304_v53 = vpop.xlane.xlu0 %303 }
 0x1c7   :  { %v417_v54 = vpop.xlane.xlu1 %416 }
 0x1c8   :  { %v420_v55 = vadd.f32 %v417_v54, %v304_v53 }
 0x1c9   :  { %v413_v36 = vpop.xlane.xlu0 %412 }
 0x1ca   :  { %424 = vst.msk [vmem:[%s719_s5 + $0x8] sm:$0xff] %vm422_vm1, %v420_v55  ;;  %v419_v56 = vadd.f32 %v413_v36, %v300_v37 }
 0x1cc   :  { %423 = vst.msk [vmem:[%s719_s5] sm:$0xff] %vm422_vm1, %v419_v56 }
 0x1cd   :  { %492 = dma.done.wait [#allocation3], 128  }
 0x1ce   :  { %493 = vsyncadd [#allocation3], 4294967168 }
 0x1cf   :  { %442 = vsyncpa [#allocation3], 1 }

</bundles_post_ra>
